<compile_context>
chip_gen: v7x
topology: tpu7x:2x2x1
jax: 0.10.0
libtpu: 0.0.40
codegen_flags: <defaults>
</compile_context>

<pallas_src>
import jax
import jax.numpy as jnp
from jax.experimental import pallas as pl
from jax.experimental.pallas import tpu as pltpu


def _round_up(a, b):
    return (a + b - 1) // b * b


def _cdiv(a, b):
    return (a + b - 1) // b


_VMEM_BUDGET = 48 * 1024 * 1024  # keep under v7x's 64 MiB physical VMEM


def _vmem_footprint(tr, h, x_itemsize):
    """Rough per-call VMEM bytes: double-buffered streams + in-kernel temps."""
    x_stream = 2 * tr * h * x_itemsize          # x tile, double-buffered
    small_io = 2 * 2 * tr * 4                   # mask + out tiles (f32), double-buffered
    temps = tr * h * (x_itemsize + 4)           # in-dtype product + f32 convert for the reduce
    resident = 2 * h * x_itemsize + 1024        # weight + bias
    return x_stream + small_io + temps + resident + (2 << 20)  # +2 MiB headroom


def _choose_row_tile(r, h, x_itemsize, rows_per_tile):
    if r <= 1024:
        # Single tile covering the whole (padded-to-128) row range.
        return _round_up(max(r, 1), 128)
    # Multiple of 1024 so the (TR//128, 128) mask/out blocks keep a sublane dim
    # that is a multiple of 8 when num_tiles > 1; cap so the grid keeps >= ~4
    # steps (lets a v7x "parallel" row axis feed both TensorCores).
    tr = min(_round_up(rows_per_tile, 1024),
             max(1024, _round_up(_cdiv(r, 4), 1024)))
    while tr > 1024 and _vmem_footprint(tr, h, x_itemsize) > _VMEM_BUDGET:
        tr = max(1024, (tr // 2) // 1024 * 1024)
    return tr


def classifier_kernel(x_ref, w_ref, mask_ref, b_ref, out_ref):
    # x_ref:    (TR, H)        input dtype (bf16 or f32), VMEM, streamed
    # w_ref:    (1, H)         same dtype as x, VMEM, resident across the grid
    # mask_ref: (TR//128, 128) f32, VMEM (lane-dense)
    # b_ref:    (1, 1)         f32, SMEM (scalar path)
    # out_ref:  (TR//128, 128) f32, VMEM (lane-dense unmasked stores)
    trs, lanes = out_ref.shape
    h_dim = x_ref.shape[-1]

    # Split the sublane dim TR -> (TRS, 128): 128 is a multiple of the sublane
    # tile, so this is a pure re-index (no data movement).  The garbage rows of
    # a ragged edge block land only in mask==0 positions.
    x = x_ref[...].reshape(trs, lanes, h_dim)

    # Linear(H -> 1).squeeze(-1): multiply in the input dtype (bf16 VALU on
    # v6e/v7x -> half the VALU cost, no per-element cast), accumulate in f32.
    prod = x * w_ref[...]                                        # (TRS,128,H)
    h = jnp.sum(prod.astype(jnp.float32), axis=-1) + b_ref[0, 0]  # (TRS,128) f32

    # sigmoid -> EUP slot; mask multiply on VPU; lane-dense stores.
    out_ref[...] = jax.nn.sigmoid(h) * mask_ref[...]


def classifier_forward(x, mask_cls, weight, bias, *, rows_per_tile=4096):
    """Pallas port of Classifier.forward.

    x:        [B, S, H]  (bf16 or f32; streamed from HBM in its own dtype)
    mask_cls: [B, S]     (bool / int / float)
    weight:   [1, H]     nn.Linear weight (out_features = 1)
    bias:     [1]        nn.Linear bias
    returns:  [B, S] f32 = sigmoid(x @ w.T + b) * mask_cls
    """
    B, S, H = x.shape
    R = B * S
    itemsize = jnp.dtype(x.dtype).itemsize

    TR = _choose_row_tile(R, H, itemsize, rows_per_tile)
    num_tiles = _cdiv(R, TR)
    R_pad = num_tiles * TR
    TRS = TR // 128

    # Flatten rows (free: merges leading dims).  x itself is NOT padded; the
    # final x block is a ragged edge block whose out-of-bounds rows are never
    # DMA'd and whose outputs are masked / sliced away.
    x2 = x.reshape(R, H)
    w = weight.reshape(1, H).astype(x.dtype)       # resident; same dtype as x
    b = bias.reshape(1, 1).astype(jnp.float32)     # scalar, lives in SMEM

    mask_f = mask_cls.reshape(R).astype(jnp.float32)
    if R_pad != R:                                  # pad only the tiny mask
        mask_f = jnp.pad(mask_f, (0, R_pad - R))
    mask2 = mask_f.reshape(R_pad // 128, 128)       # lane-dense slab

    vmem_limit = int(max(16 << 20, min(_vmem_footprint(TR, H, itemsize), 100 << 20)))

    out2 = pl.pallas_call(
        classifier_kernel,
        out_shape=jax.ShapeDtypeStruct((R_pad // 128, 128), jnp.float32),
        grid=(num_tiles,),
        in_specs=[
            pl.BlockSpec((TR, H), lambda i: (i, 0)),             # x (streamed, ragged tail ok)
            pl.BlockSpec((1, H), lambda i: (0, 0)),               # weight (resident)
            pl.BlockSpec((TRS, 128), lambda i: (i, 0)),           # mask (lane-dense)
            pl.BlockSpec(memory_space=pltpu.MemorySpace.SMEM),    # bias scalar
        ],
        out_specs=pl.BlockSpec((TRS, 128), lambda i: (i, 0)),
        compiler_params=pltpu.CompilerParams(
            dimension_semantics=("parallel",),   # v7x: shard rows over both TCs
            vmem_limit_bytes=vmem_limit,
        ),
    )(x2, w, mask2, b)

    return out2.reshape(R_pad)[:R].reshape(B, S)


def _reference(x, mask_cls, weight, bias):
    x32 = x.astype(jnp.float32)
    h = jnp.einsum("bsh,h->bs", x32, weight[0].astype(jnp.float32)) + bias[0]
    return jax.nn.sigmoid(h) * mask_cls.astype(jnp.float32)


if __name__ == "__main__":
    key = jax.random.PRNGKey(0)

    def run_case(B, S, H, dtype, case_key):
        kx, km, kw, kb = jax.random.split(case_key, 4)
        bound = 1.0 / (H ** 0.5)                  # nn.Linear default init range
        x = jax.random.normal(kx, (B, S, H), dtype=dtype)
        mask_cls = (jax.random.uniform(km, (B, S)) > 0.3).astype(jnp.float32)
        weight = jax.random.uniform(kw, (1, H), minval=-bound, maxval=bound,
                                    dtype=jnp.float32)
        bias = jax.random.uniform(kb, (1,), minval=-bound, maxval=bound,
                                  dtype=jnp.float32)

        out = jax.block_until_ready(classifier_forward(x, mask_cls, weight, bias))
        ref = _reference(x, mask_cls, weight, bias)
        assert out.shape == (B, S)
        # bf16 multiply (f32 accumulation) drifts ~1e-3 relative vs f32 reference.
        tol = 5e-3 if dtype == jnp.bfloat16 else 1e-5
        assert jnp.allclose(out, ref, atol=tol, rtol=tol), (B, S, H, str(dtype))

    k1, k2, k3 = jax.random.split(key, 3)
    # Primary small case: batch=2, num_sentences=8, hidden=32 (bf16 activations).
    run_case(2, 8, 32, jnp.bfloat16, k1)
    # Multi-tile + ragged tail: R = 1200 -> two 1024-row tiles, the edge block's
    # 848 garbage rows are masked to zero and sliced away (no host-side pad of x).
    run_case(4, 300, 64, jnp.bfloat16, k2)
    # f32 activation path.
    run_case(2, 8, 32, jnp.float32, k3)

    print("KERNEL_OK")
</pallas_src>

<mosaic_0001>
module attributes {stable_mosaic.version = 11 : i64} {
  func.func @classifier_kernel(%arg0: i32, %arg1: memref<128x32xbf16, #tpu.memory_space<vmem>>, %arg2: memref<1x32xbf16, #tpu.memory_space<vmem>>, %arg3: memref<1x128xf32, #tpu.memory_space<vmem>>, %arg4: memref<1x1xf32, #tpu.memory_space<smem>>, %arg5: memref<1x128xf32, #tpu.memory_space<vmem>>) attributes {dimension_semantics = [#tpu.dimension_semantics<parallel>], iteration_bounds = array<i64: 1>, scalar_prefetch = 0 : i64, scratch_operands = 0 : i64, tpu.core_type = #tpu.core_type<tc>, window_params = [{transform_indices = @transform_0, window_bounds = array<i64: 128, 32>}, {pipeline_mode = #tpu.pipeline_mode<synchronous>, transform_indices = @transform_1, window_bounds = array<i64: 1, 32>}, {transform_indices = @transform_2, window_bounds = array<i64: 1, 128>}, {transform_indices = @transform_3, window_bounds = array<i64: 1, 1>}, {transform_indices = @transform_4, window_bounds = array<i64: 1, 128>}]} {
    %c0 = arith.constant 0 : index
    %c0_0 = arith.constant 0 : index
    %0 = vector.load %arg1[%c0, %c0_0] : memref<128x32xbf16, #tpu.memory_space<vmem>>, vector<128x32xbf16>
    %1 = vector.shape_cast %0 : vector<128x32xbf16> to vector<1x128x32xbf16>
    %c0_1 = arith.constant 0 : index
    %c0_2 = arith.constant 0 : index
    %2 = vector.load %arg2[%c0_1, %c0_2] : memref<1x32xbf16, #tpu.memory_space<vmem>>, vector<1x32xbf16>
    %3 = vector.shape_cast %2 : vector<1x32xbf16> to vector<1x1x32xbf16>
    %4 = vector.broadcast %3 : vector<1x1x32xbf16> to vector<1x128x32xbf16>
    %5 = arith.mulf %1, %4 : vector<1x128x32xbf16>
    %6 = arith.extf %5 : vector<1x128x32xbf16> to vector<1x128x32xf32>
    %cst = arith.constant dense<0.000000e+00> : vector<1x128xf32>
    %7 = vector.multi_reduction <add>, %6, %cst [2] : vector<1x128x32xf32> to vector<1x128xf32>
    %c0_3 = arith.constant 0 : index
    %c0_4 = arith.constant 0 : index
    %8 = memref.load %arg4[%c0_3, %c0_4] : memref<1x1xf32, #tpu.memory_space<smem>>
    %9 = vector.broadcast %8 : f32 to vector<1x128xf32>
    %10 = arith.addf %7, %9 : vector<1x128xf32>
    %11 = arith.negf %10 : vector<1x128xf32>
    %12 = math.exp %11 : vector<1x128xf32>
    %cst_5 = arith.constant 1.000000e+00 : f32
    %13 = vector.broadcast %cst_5 : f32 to vector<1x128xf32>
    %14 = arith.addf %13, %12 : vector<1x128xf32>
    %15 = arith.divf %13, %14 : vector<1x128xf32>
    %c0_6 = arith.constant 0 : index
    %c0_7 = arith.constant 0 : index
    %16 = vector.load %arg3[%c0_6, %c0_7] : memref<1x128xf32, #tpu.memory_space<vmem>>, vector<1x128xf32>
    %17 = arith.mulf %15, %16 : vector<1x128xf32>
    %c0_8 = arith.constant 0 : index
    %c0_9 = arith.constant 0 : index
    %18 = vector.load %arg5[%c0_8, %c0_9] : memref<1x128xf32, #tpu.memory_space<vmem>>, vector<1x128xf32>
    tpu.vector_store %arg5[%c0_8, %c0_9], %17 {strides = array<i32>} : memref<1x128xf32, #tpu.memory_space<vmem>>, vector<1x128xf32>,
    return
  }
  func.func @transform_0(%arg0: i32) -> (i32, i32) {
    %c0_i32 = arith.constant 0 : i32
    %c0_i32_0 = arith.constant 0 : i32
    return %arg0, %c0_i32 : i32, i32
  }
  func.func @transform_1(%arg0: i32) -> (i32, i32) {
    %c0_i32 = arith.constant 0 : i32
    %c0_i32_0 = arith.constant 0 : i32
    %c0_i32_1 = arith.constant 0 : i32
    return %c0_i32, %c0_i32_0 : i32, i32
  }
  func.func @transform_2(%arg0: i32) -> (i32, i32) {
    %c0_i32 = arith.constant 0 : i32
    %c0_i32_0 = arith.constant 0 : i32
    return %arg0, %c0_i32 : i32, i32
  }
  func.func @transform_3(%arg0: i32) -> (i32, i32) {
    %c0_i32 = arith.constant 0 : i32
    %c0_i32_0 = arith.constant 0 : i32
    %c0_i32_1 = arith.constant 0 : i32
    return %c0_i32, %c0_i32_0 : i32, i32
  }
  func.func @transform_4(%arg0: i32) -> (i32, i32) {
    %c0_i32 = arith.constant 0 : i32
    %c0_i32_0 = arith.constant 0 : i32
    return %arg0, %c0_i32 : i32, i32
  }
}

</mosaic_0001>

<bundles_post_ra>
// kernel: tpu_custom_call.1
= control target key start
LH: loop header
LB: loop body
LE: loop exit
PB: predicated region body
PF: predicated region fallthrough
CT: control target
= control target key end

     0   :  { %10 = vsyncpa [#allocation4], 0  ;;  %s840_s0 = inlined_call_operand.hbm [shape: bf16[16,32], index: 0, kind: input, shape index: {}]   ;;  %s841_s1 = inlined_call_operand.vmem [shape: bf16[1,32], index: 1, kind: input, shape index: {}]   ;;  %s842_s2 = inlined_call_operand.vmem [shape: f32[1,128], index: 2, kind: input, shape index: {}]   ;;  %s843_s3 = inlined_call_operand.<no memory space> [shape: f32[1,1], index: 3, kind: input, shape index: {}]   ;;  %s844_s4 = inlined_call_operand.hbm [shape: f32[1,128], index: 4, kind: output, shape index: {}]  }
   0x1   :  { %11 = vsyncpa [#allocation5], 0 }
   0x2   :  { %16 = vsyncadd [#allocation4], 896  ;;  %s686_s15 = smov [#allocation3]   ;;  %s638_s19 = scalar_lea.hbm %s840_s0, 128 }
   0x3   :  { %s17_s16 = sshll.u32 %s686_s15, 4  ;;  %p639_p0 = scmp.ne.s32.totalorder %s840_s0, %s638_s19  ;;  %s18_s16 = int_to_ptr.vmem [resolvable:$true] %s17_s16 }
   0x4   :  { %p642_p1 = scmp.lt.u32.totalorder %s638_s19, %s840_s0 }
   0x6   :  { %p644_p2 = pnand %p642_p1, %p639_p0 }
   0x8   :  { %647 = shalt.err (!%p644_p2)
}
   0x9   :  { %s648_s24 = scalar_lea.vmem %s18_s16, 128  ;;  %s652_s25 = scalar_lea.vmem %s18_s16, 1024 }
   0xa   :  { %p649_p3 = scmp.ne.s32.totalorder %s18_s16, %s648_s24  ;;  %p653_p4 = scmp.lt.s32.totalorder %s18_s16, %s18_s16 }
   0xb   :  { %p654_p5 = scmp.lt.s32.totalorder %s652_s25, %s648_s24 }
   0xd   :  { %p655_p6 = por %p654_p5, %p653_p4 }
   0xf   :  { %p656_p7 = pnand %p655_p6, %p649_p3 }
  0x11   :  { %659 = shalt.err (!%p656_p7)
}
  0x12   :  { %s687_s26 = smov 64   ;;  %s688_s27 = smov 4  }
  0x13   :  { %23 = dma.hbm_to_vmem [thread:$0]  %s840_s0, 128, %s18_s16, [#allocation4], %s687_s26, %s687_s26, %s688_s27  }
  0x14   :  { %682 = dma.done.wait [#allocation4], 1024  }
  0x15   :  { %683 = vsyncadd [#allocation4], 4294966272  ;;  %v53_v0 = vlaneseq  ;;  %v49_v3 = vld [vmem:[%s841_s1] sm:$0x1]  ;;  %v35_v5 = vld [vmem:[#allocation3 + $0x8] sm:$0xf] }
  0x16   :  { %v51_v4 = vpack.i.b16 %v49_v3, %v49_v3  ;;  %v33_v7 = vld [vmem:[#allocation3] sm:$0xf]  ;;  %v36_v8 = vld [vmem:[#allocation3 + $0xc] sm:$0xf]  ;;  %v34_v9 = vld [vmem:[#allocation3 + $0x4] sm:$0xf] }
  0x17   :  { %v729_v1 = vshrl.u32 %v53_v0, 7  ;;  %v38_v11 = vld [vmem:[#allocation3 + $0x14] sm:$0xf]  ;;  %v37_v12 = vld [vmem:[#allocation3 + $0x10] sm:$0xf]  ;;  %vm93_vm0 = vcmask 261120  }
  0x18   :  { %v40_v23 = vld [vmem:[#allocation3 + $0x1c] sm:$0xf]  ;;  %v39_v24 = vld [vmem:[#allocation3 + $0x18] sm:$0xf]  ;;  %v42_v33 = vld [vmem:[#allocation3 + $0x24] sm:$0xf] }
  0x19   :  { %v55_v2 = vsub.s32 0, %v729_v1  ;;  %v41_v34 = vld [vmem:[#allocation3 + $0x20] sm:$0xf]  ;;  %v44_v41 = vld [vmem:[#allocation3 + $0x2c] sm:$0xf]  ;;  %vm432_vm1 = vcmask 130112  }
  0x1a   :  { %v43_v42 = vld [vmem:[#allocation3 + $0x28] sm:$0xf]  ;;  %v46_v49 = vld [vmem:[#allocation3 + $0x34] sm:$0xf]  ;;  %v45_v50 = vld [vmem:[#allocation3 + $0x30] sm:$0xf] }
  0x1b   :  { %v56_v6 = vrot.slane %v51_v4, %v55_v2  ;;  %v48_v57 = vld [vmem:[#allocation3 + $0x3c] sm:$0xf]  ;;  %v47_v58 = vld [vmem:[#allocation3 + $0x38] sm:$0xf]  ;;  %vm439_vm2 = vcmask 195712   ;;  %vm446_vm3 = vcmask 261312  }
  0x1c   :  { %vm453_vm4 = vcmask 326912   ;;  %vm460_vm5 = vcmask 392512   ;;  %vm467_vm6 = vcmask 458112   ;;  %vm474_vm7 = vcmask 523712  }
  0x1d   :  { %v735_v10 = vcombine.low %v56_v6, %v56_v6  ;;  %vm481_vm8 = vcmask 589312   ;;  %vm488_vm9 = vcmask 654912   ;;  %vm495_vm10 = vcmask 720512  }
  0x1e   :  { %vm502_vm11 = vcmask 786112   ;;  %vm509_vm12 = vcmask 851712   ;;  %vm516_vm13 = vcmask 917312   ;;  %vm523_vm14 = vcmask 982912  }
  0x1f   :  { %v63_v13 = vmul.bf16 %v735_v10, %v35_v5  ;;  %v61_v14 = vmul.bf16 %v735_v10, %v33_v7  ;;  %v64_v15 = vmul.bf16 %v735_v10, %v36_v8  ;;  %v62_v16 = vmul.bf16 %v735_v10, %v34_v9  ;;  %v566_v9 = vld [vmem:[%s842_s2] ss:$0 sm:$0xff] }
  0x20   :  { %v66_v17 = vmul.bf16 %v735_v10, %v38_v11  ;;  %v65_v18 = vmul.bf16 %v735_v10, %v37_v12  ;;  %v68_v27 = vmul.bf16 %v735_v10, %v40_v23  ;;  %v67_v28 = vmul.bf16 %v735_v10, %v39_v24 }
  0x21   :  { %v79_v19 = vunpack.c.l.bf16 %v63_v13  ;;  %v77_v20 = vunpack.c.l.bf16 %v61_v14  ;;  %v80_v21 = vunpack.c.l.bf16 %v64_v15  ;;  %v78_v22 = vunpack.c.l.bf16 %v62_v16 }
  0x22   :  { %v82_v31 = vunpack.c.l.bf16 %v66_v17  ;;  %v81_v32 = vunpack.c.l.bf16 %v65_v18  ;;  %v84_v35 = vunpack.c.l.bf16 %v68_v27  ;;  %v83_v36 = vunpack.c.l.bf16 %v67_v28 }
  0x23   :  { %v100_v25 = vsel %vm93_vm0, %v79_v19, 0.0  ;;  %v94_v26 = vsel %vm93_vm0, %v77_v20, 0.0  ;;  %v103_v29 = vsel %vm93_vm0, %v80_v21, 0.0  ;;  %v97_v30 = vsel %vm93_vm0, %v78_v22, 0.0 }
  0x24   :  { %101 = vadd.xlane.f32.xlu1 %v100_v25  ;;  %95 = vadd.xlane.f32.xlu0 %v94_v26  ;;  %v109_v37 = vsel %vm93_vm0, %v82_v31, 0.0  ;;  %v106_v38 = vsel %vm93_vm0, %v81_v32, 0.0  ;;  %v70_v39 = vmul.bf16 %v735_v10, %v42_v33  ;;  %v69_v40 = vmul.bf16 %v735_v10, %v41_v34 }
  0x25   :  { %v115_v43 = vsel %vm93_vm0, %v84_v35, 0.0  ;;  %v112_v44 = vsel %vm93_vm0, %v83_v36, 0.0  ;;  %v72_v47 = vmul.bf16 %v735_v10, %v44_v41  ;;  %v71_v48 = vmul.bf16 %v735_v10, %v43_v42 }
  0x26   :  { %v86_v45 = vunpack.c.l.bf16 %v70_v39  ;;  %v85_v46 = vunpack.c.l.bf16 %v69_v40  ;;  %v74_v51 = vmul.bf16 %v735_v10, %v46_v49  ;;  %v73_v52 = vmul.bf16 %v735_v10, %v45_v50 }
  0x27   :  { %v88_v55 = vunpack.c.l.bf16 %v72_v47  ;;  %v87_v56 = vunpack.c.l.bf16 %v71_v48  ;;  %v76_v59 = vmul.bf16 %v735_v10, %v48_v57  ;;  %v75_v60 = vmul.bf16 %v735_v10, %v47_v58 }
  0x28   :  { %104 = vadd.xlane.f32.xlu1 %v103_v29  ;;  %98 = vadd.xlane.f32.xlu0 %v97_v30  ;;  %v121_v53 = vsel %vm93_vm0, %v86_v45, 0.0  ;;  %v118_v54 = vsel %vm93_vm0, %v85_v46, 0.0  ;;  %v90_v63 = vunpack.c.l.bf16 %v74_v51  ;;  %v89_v2 = vunpack.c.l.bf16 %v73_v52 }
  0x29   :  { %v127_v61 = vsel %vm93_vm0, %v88_v55, 0.0  ;;  %v124_v62 = vsel %vm93_vm0, %v87_v56, 0.0  ;;  %v92_v5 = vunpack.c.l.bf16 %v76_v59  ;;  %v91_v6 = vunpack.c.l.bf16 %v75_v60 }
  0x2a   :  { %v133_v3 = vsel %vm93_vm0, %v90_v63, 0.0  ;;  %v130_v4 = vsel %vm93_vm0, %v89_v2, 0.0  ;;  %v689_v10 = vmov 0   ;;  %v775_v11 = vstv %s843_s3  ;;  %s690_s3 = smov [#allocation6]  }
  0x2b   :  { %v139_v7 = vsel %vm93_vm0, %v92_v5, 0.0  ;;  %v136_v8 = vsel %vm93_vm0, %v91_v6, 0.0  ;;  %572 = vset.pattern.permute.xlu0 %v689_v10  ;;  %573 = vset.pattern.permute.xlu1 %v689_v10  ;;  %s540_s7 = sshll.u32 %s690_s3, 4  ;;  %vm530_vm15 = vcmask 1048512   ;;  %s541_s7 = int_to_ptr.vmem [resolvable:$true] %s540_s7 }
  0x2c   :  { %110 = vadd.xlane.f32.xlu1 %v109_v37  ;;  %107 = vadd.xlane.f32.xlu0 %v106_v38  ;;  %s660_s8 = scalar_lea.vmem %s541_s7, 16  ;;  %s664_s9 = scalar_lea.vmem %s541_s7, 32 }
  0x2d   :  { %p661_p8 = scmp.ne.s32.totalorder %s541_s7, %s660_s8  ;;  %p665_p9 = scmp.lt.s32.totalorder %s541_s7, %s541_s7 }
  0x2e   :  { %p666_p10 = scmp.lt.s32.totalorder %s664_s9, %s660_s8 }
  0x30   :  { %116 = vadd.xlane.f32.xlu1 %v115_v43  ;;  %113 = vadd.xlane.f32.xlu0 %v112_v44  ;;  %p667_p11 = por %p666_p10, %p665_p9 }
  0x32   :  { %p668_p12 = pnand %p667_p11, %p661_p8 }
  0x34   :  { %122 = vadd.xlane.f32.xlu1 %v121_v53  ;;  %119 = vadd.xlane.f32.xlu0 %v118_v54 }
  0x38   :  { %128 = vadd.xlane.f32.xlu1 %v127_v61  ;;  %125 = vadd.xlane.f32.xlu0 %v124_v62 }
  0x3c   :  { %134 = vadd.xlane.f32.xlu1 %v133_v3  ;;  %131 = vadd.xlane.f32.xlu0 %v130_v4 }
  0x40   :  { %140 = vadd.xlane.f32.xlu1 %v139_v7  ;;  %137 = vadd.xlane.f32.xlu0 %v136_v8 }
  0x51   :  { %267 = vbcast.lane.b32.xlu1 %v566_v9, 264 }
  0x55   :  { %271 = vbcast.lane.b32.xlu1 %v566_v9, 272 }
  0x56   :  { %263 = vbcast.lane.b32.xlu0 %v566_v9, 256 }
  0x59   :  { %275 = vbcast.lane.b32.xlu1 %v566_v9, 280 }
  0x5a   :  { %279 = vbcast.lane.b32.xlu0 %v566_v9, 288 }
  0x5d   :  { %283 = vbcast.lane.b32.xlu1 %v566_v9, 296 }
  0x5e   :  { %287 = vbcast.lane.b32.xlu0 %v566_v9, 304 }
  0x61   :  { %291 = vbcast.lane.b32.xlu1 %v566_v9, 312 }
  0x62   :  { %295 = vbcast.lane.b32.xlu0 %v566_v9, 320 }
  0x65   :  { %299 = vbcast.lane.b32.xlu1 %v566_v9, 328 }
  0x66   :  { %303 = vbcast.lane.b32.xlu0 %v566_v9, 336 }
  0x69   :  { %307 = vbcast.lane.b32.xlu1 %v566_v9, 344 }
  0x6a   :  { %311 = vbcast.lane.b32.xlu0 %v566_v9, 352 }
  0x6d   :  { %315 = vbcast.lane.b32.xlu1 %v566_v9, 360 }
  0x6e   :  { %319 = vbcast.lane.b32.xlu0 %v566_v9, 368 }
  0x71   :  { %323 = vbcast.lane.b32.xlu1 %v566_v9, 376 }
  0xb1   :  { %v102_v12 = vpop.xlane.xlu1 %101  ;;  %v96_v13 = vpop.xlane.xlu0 %95 }
  0xb2   :  { %v146_v14 = vadd.f32 %v775_v11, %v102_v12  ;;  %v144_v15 = vadd.f32 %v775_v11, %v96_v13 }
  0xb4   :  { %v550_v16 = vmul.f32 -1.442695, %v144_v15  ;;  %v552_v19 = vmul.f32 -1.442695, %v146_v14 }
  0xb5   :  { %v105_v17 = vpop.xlane.xlu1 %104  ;;  %v99_v18 = vpop.xlane.xlu0 %98 }
  0xb6   :  { %v147_v20 = vadd.f32 %v775_v11, %v105_v17  ;;  %v145_v21 = vadd.f32 %v775_v11, %v99_v18  ;;  %574 = vpow2.f32 %v550_v16 }
  0xb7   :  { %576 = vpow2.f32 %v552_v19 }
  0xb8   :  { %v551_v22 = vmul.f32 -1.442695, %v145_v21  ;;  %v553_v25 = vmul.f32 -1.442695, %v147_v20 }
  0xb9   :  { %v111_v23 = vpop.xlane.xlu1 %110  ;;  %v108_v24 = vpop.xlane.xlu0 %107 }
  0xba   :  { %v149_v26 = vadd.f32 %v775_v11, %v111_v23  ;;  %v148_v27 = vadd.f32 %v775_v11, %v108_v24  ;;  %578 = vpow2.f32 %v551_v22 }
  0xbb   :  { %580 = vpow2.f32 %v553_v25 }
  0xbc   :  { %v554_v28 = vmul.f32 -1.442695, %v148_v27  ;;  %v555_v29 = vmul.f32 -1.442695, %v149_v26 }
  0xbd   :  { %v117_v30 = vpop.xlane.xlu1 %116  ;;  %v114_v31 = vpop.xlane.xlu0 %113 }
  0xbe   :  { %v151_v32 = vadd.f32 %v775_v11, %v117_v30  ;;  %v150_v33 = vadd.f32 %v775_v11, %v114_v31  ;;  %582 = vpow2.f32 %v554_v28 }
  0xbf   :  { %584 = vpow2.f32 %v555_v29 }
  0xc0   :  { %v575_v34 = vpop.eup %574  ;;  %v556_v35 = vmul.f32 -1.442695, %v150_v33  ;;  %v557_v39 = vmul.f32 -1.442695, %v151_v32 }
  0xc1   :  { %v123_v36 = vpop.xlane.xlu1 %122  ;;  %v120_v37 = vpop.xlane.xlu0 %119  ;;  %v208_v38 = vadd.f32 1.0, %v575_v34 }
  0xc2   :  { %v153_v40 = vadd.f32 %v775_v11, %v123_v36  ;;  %v152_v41 = vadd.f32 %v775_v11, %v120_v37  ;;  %v577_v42 = vpop.eup %576 }
  0xc3   :  { %586 = vrcp.f32 %v208_v38  ;;  %v210_v51 = vadd.f32 1.0, %v577_v42 }
  0xc4   :  { %v559_v43 = vmul.f32 -1.442695, %v153_v40  ;;  %v579_v44 = vpop.eup %578  ;;  %588 = vpow2.f32 %v556_v35  ;;  %v558_v45 = vmul.f32 -1.442695, %v152_v41 }
  0xc5   :  { %v129_v46 = vpop.xlane.xlu1 %128  ;;  %v126_v47 = vpop.xlane.xlu0 %125  ;;  %v209_v48 = vadd.f32 1.0, %v579_v44  ;;  %590 = vpow2.f32 %v557_v39 }
  0xc6   :  { %v155_v49 = vadd.f32 %v775_v11, %v129_v46  ;;  %v154_v50 = vadd.f32 %v775_v11, %v126_v47  ;;  %592 = vpow2.f32 %v559_v43  ;;  %v581_v52 = vpop.eup %580 }
  0xc7   :  { %594 = vrcp.f32 %v209_v48  ;;  %v211_v62 = vadd.f32 1.0, %v581_v52 }
  0xc8   :  { %v583_v53 = vpop.eup %582  ;;  %596 = vpow2.f32 %v558_v45  ;;  %v560_v54 = vmul.f32 -1.442695, %v154_v50  ;;  %v561_v58 = vmul.f32 -1.442695, %v155_v49 }
  0xc9   :  { %v135_v55 = vpop.xlane.xlu1 %134  ;;  %v132_v56 = vpop.xlane.xlu0 %131  ;;  %v212_v57 = vadd.f32 1.0, %v583_v53  ;;  %598 = vrcp.f32 %v210_v51 }
  0xca   :  { %v157_v59 = vadd.f32 %v775_v11, %v135_v55  ;;  %v156_v60 = vadd.f32 %v775_v11, %v132_v56  ;;  %v585_v61 = vpop.eup %584 }
  0xcb   :  { %600 = vrcp.f32 %v212_v57  ;;  %v213_v9 = vadd.f32 1.0, %v585_v61 }
  0xcc   :  { %v562_v63 = vmul.f32 -1.442695, %v156_v60  ;;  %602 = vpow2.f32 %v560_v54  ;;  %v563_v2 = vmul.f32 -1.442695, %v157_v59 }
  0xcd   :  { %v141_v3 = vpop.xlane.xlu1 %140  ;;  %v138_v4 = vpop.xlane.xlu0 %137  ;;  %604 = vpow2.f32 %v561_v58 }
  0xce   :  { %v587_v5 = vpop.eup %586  ;;  %v159_v6 = vadd.f32 %v775_v11, %v141_v3  ;;  %v158_v7 = vadd.f32 %v775_v11, %v138_v4  ;;  %606 = vrcp.f32 %v211_v62 }
  0xcf   :  { %v589_v8 = vpop.eup %588  ;;  %608 = vpow2.f32 %v562_v63 }
  0xd0   :  { %v591_v10 = vpop.eup %590  ;;  %v214_v12 = vadd.f32 1.0, %v589_v8  ;;  %v565_v13 = vmul.f32 -1.442695, %v159_v6  ;;  %610 = vpow2.f32 %v563_v2  ;;  %v564_v15 = vmul.f32 -1.442695, %v158_v7 }
  0xd1   :  { %v593_v14 = vpop.eup %592  ;;  %v268_v16 = vpop.permute.xlu1 %267  ;;  %v215_v21 = vadd.f32 1.0, %v591_v10 }
  0xd2   :  { %v264_v17 = vpop.permute.xlu0 %263  ;;  %v595_v18 = vpop.eup %594  ;;  %612 = vrcp.f32 %v214_v12  ;;  %v217_v29 = vadd.f32 1.0, %v593_v14 }
  0xd3   :  { %v341_v19 = vmul.f32 %v587_v5, %v264_v17  ;;  %v597_v20 = vpop.eup %596  ;;  %614 = vrcp.f32 %v213_v9  ;;  %v342_v22 = vmul.f32 %v595_v18, %v268_v16  ;;  %v794_v17 = vand.u32 127, %v53_v0 }
  0xd4   :  { %v216_v11 = vadd.f32 1.0, %v597_v20  ;;  %616 = vpow2.f32 %v565_v13  ;;  %v599_v23 = vpop.eup %598 }
  0xd5   :  { %374 = vperm.xlu0 %572, %v341_v19   ;;  %618 = vpow2.f32 %v564_v15  ;;  %377 = vperm.xlu1 %573, %v342_v22   ;;  %v272_v24 = vpop.permute.xlu1 %271  ;;  %v601_v26 = vpop.eup %600  ;;  %v427_v18 = vadd.s32 4294967288, %v794_v17  ;;  %v434_v19 = vadd.s32 4294967280, %v794_v17  ;;  %v425_v22 = vsub.s32 %v794_v17, %v729_v1 }
  0xd6   :  { %v280_v25 = vpop.permute.xlu0 %279  ;;  %620 = vrcp.f32 %v216_v11  ;;  %v343_v27 = vmul.f32 %v599_v23, %v272_v24  ;;  %v603_v28 = vpop.eup %602  ;;  %v441_v11 = vadd.s32 4294967272, %v794_v17 }
  0xd7   :  { %622 = vrcp.f32 %v215_v21  ;;  %v605_v30 = vpop.eup %604  ;;  %v218_v31 = vadd.f32 1.0, %v603_v28  ;;  %v345_v34 = vmul.f32 %v601_v26, %v280_v25  ;;  %v430_v20 = vsub.s32 %v427_v18, %v729_v1 }
  0xd8   :  { %v607_v32 = vpop.eup %606  ;;  %v219_v39 = vadd.f32 1.0, %v605_v30  ;;  %v437_v24 = vsub.s32 %v434_v19, %v729_v1  ;;  %v448_v25 = vadd.s32 4294967264, %v794_v17  ;;  %v444_v28 = vsub.s32 %v441_v11, %v729_v1 }
  0xd9   :  { %380 = vperm.xlu1 %573, %v343_v27   ;;  %v276_v33 = vpop.permute.xlu1 %275  ;;  %v609_v36 = vpop.eup %608  ;;  %624 = vrcp.f32 %v218_v31  ;;  %v525_v18 = vadd.s32 4294967176, %v794_v17 }
  0xda   :  { %v288_v35 = vpop.permute.xlu0 %287  ;;  %v344_v37 = vmul.f32 %v607_v32, %v276_v33  ;;  %v611_v38 = vpop.eup %610  ;;  %626 = vrcp.f32 %v217_v29  ;;  %v220_v40 = vadd.f32 1.0, %v609_v36  ;;  %v455_v29 = vadd.s32 4294967256, %v794_v17 }
  0xdb   :  { %v221_v49 = vadd.f32 1.0, %v611_v38  ;;  %v451_v31 = vsub.s32 %v448_v25, %v729_v1  ;;  %v462_v32 = vadd.s32 4294967248, %v794_v17  ;;  %v469_v38 = vadd.s32 4294967240, %v794_v17 }
  0xdc   :  { %v613_v41 = vpop.eup %612  ;;  %383 = vperm.xlu0 %572, %v344_v37   ;;  %628 = vrcp.f32 %v220_v40  ;;  %v458_v37 = vsub.s32 %v455_v29, %v729_v1  ;;  %v528_v25 = vsub.s32 %v525_v18, %v729_v1 }
  0xdd   :  { %v615_v42 = vpop.eup %614  ;;  %386 = vperm.xlu1 %573, %v345_v34   ;;  %v284_v43 = vpop.permute.xlu1 %283  ;;  %v347_v44 = vmul.f32 %v613_v41, %v288_v35  ;;  %630 = vrcp.f32 %v219_v39  ;;  %v465_v41 = vsub.s32 %v462_v32, %v729_v1 }
  0xde   :  { %v296_v45 = vpop.permute.xlu0 %295  ;;  %v617_v46 = vpop.eup %616  ;;  %v346_v47 = vmul.f32 %v615_v42, %v284_v43  ;;  %v476_v42 = vadd.s32 4294967232, %v794_v17 }
  0xdf   :  { %v619_v48 = vpop.eup %618  ;;  %v223_v57 = vadd.f32 1.0, %v617_v46 }
  0xe0   :  { %v621_v50 = vpop.eup %620  ;;  %v222_v51 = vadd.f32 1.0, %v619_v48  ;;  %389 = vperm.xlu0 %572, %v346_v47   ;;  %v472_v47 = vsub.s32 %v469_v38, %v729_v1  ;;  %v483_v48 = vadd.s32 4294967224, %v794_v17 }
  0xe1   :  { %v623_v52 = vpop.eup %622  ;;  %392 = vperm.xlu1 %573, %v347_v44   ;;  %v292_v53 = vpop.permute.xlu1 %291  ;;  %v349_v54 = vmul.f32 %v621_v50, %v296_v45 }
  0xe2   :  { %v304_v55 = vpop.permute.xlu0 %303  ;;  %632 = vrcp.f32 %v222_v51  ;;  %v348_v56 = vmul.f32 %v623_v52, %v292_v53  ;;  %v479_v51 = vsub.s32 %v476_v42, %v729_v1  ;;  %v490_v52 = vadd.s32 4294967216, %v794_v17 }
  0xe3   :  { %634 = vrcp.f32 %v221_v49  ;;  %v625_v58 = vpop.eup %624 }
  0xe4   :  { %395 = vperm.xlu0 %572, %v348_v56   ;;  %v627_v59 = vpop.eup %626  ;;  %v351_v61 = vmul.f32 %v625_v58, %v304_v55  ;;  %636 = vrcp.f32 %v223_v57  ;;  %v486_v57 = vsub.s32 %v483_v48, %v729_v1  ;;  %v497_v58 = vadd.s32 4294967208, %v794_v17 }
  0xe5   :  { %398 = vperm.xlu1 %573, %v349_v54   ;;  %v300_v60 = vpop.permute.xlu1 %299 }
  0xe6   :  { %v312_v62 = vpop.permute.xlu0 %311  ;;  %v350_v63 = vmul.f32 %v627_v59, %v300_v60  ;;  %v629_v2 = vpop.eup %628 }
  0xe7   :  { %v631_v3 = vpop.eup %630  ;;  %v353_v5 = vmul.f32 %v629_v2, %v312_v62  ;;  %v504_v62 = vadd.s32 4294967200, %v794_v17 }
  0xe8   :  { %401 = vperm.xlu0 %572, %v350_v63  }
  0xe9   :  { %404 = vperm.xlu1 %573, %v351_v61   ;;  %v308_v4 = vpop.permute.xlu1 %307  ;;  %v493_v61 = vsub.s32 %v490_v52, %v729_v1 }
  0xea   :  { %v352_v6 = vmul.f32 %v631_v3, %v308_v4  ;;  %v320_v7 = vpop.permute.xlu0 %319 }
  0xec   :  { %v633_v8 = vpop.eup %632  ;;  %407 = vperm.xlu0 %572, %v352_v6   ;;  %v511_v6 = vadd.s32 4294967192, %v794_v17 }
  0xed   :  { %v635_v9 = vpop.eup %634  ;;  %410 = vperm.xlu1 %573, %v353_v5   ;;  %v316_v10 = vpop.permute.xlu1 %315  ;;  %v355_v12 = vmul.f32 %v633_v8, %v320_v7  ;;  %v500_v5 = vsub.s32 %v497_v58, %v729_v1 }
  0xee   :  { %v354_v13 = vmul.f32 %v635_v9, %v316_v10  ;;  %v637_v14 = vpop.eup %636  ;;  %v507_v9 = vsub.s32 %v504_v62, %v729_v1  ;;  %v518_v10 = vadd.s32 4294967184, %v794_v17 }
  0xf0   :  { %413 = vperm.xlu0 %572, %v354_v13  }
  0xf1   :  { %416 = vperm.xlu1 %573, %v355_v12   ;;  %v324_v15 = vpop.permute.xlu1 %323 }
  0xf2   :  { %v356_v16 = vmul.f32 %v637_v14, %v324_v15 }
  0xf4   :  { %419 = vperm.xlu0 %572, %v356_v16   ;;  %v514_v16 = vsub.s32 %v511_v6, %v729_v1 }
 0x154   :  { %v378_v21 = vpop.permute.xlu1 %377  ;;  %v375_v23 = vpop.permute.xlu0 %374 }
 0x155   :  { %v431_v26 = vrot.slane %v378_v21, %v430_v20  ;;  %v426_v0 = vrot.slane %v375_v23, %v425_v22  ;;  %v521_v21 = vsub.s32 %v518_v10, %v729_v1 }
 0x157   :  { %v433_v34 = vsel %vm432_vm1, %v431_v26, %v426_v0 }
 0x158   :  { %v381_v27 = vpop.permute.xlu1 %380 }
 0x159   :  { %v438_v30 = vrot.slane %v381_v27, %v437_v24 }
 0x15b   :  { %v384_v33 = vpop.permute.xlu0 %383  ;;  %v440_v39 = vsel %vm439_vm2, %v438_v30, %v433_v34 }
 0x15c   :  { %v387_v35 = vpop.permute.xlu1 %386  ;;  %v445_v36 = vrot.slane %v384_v33, %v444_v28 }
 0x15d   :  { %v452_v40 = vrot.slane %v387_v35, %v451_v31 }
 0x15e   :  { %v447_v43 = vsel %vm446_vm3, %v445_v36, %v440_v39 }
 0x15f   :  { %v390_v44 = vpop.permute.xlu0 %389  ;;  %v454_v50 = vsel %vm453_vm4, %v452_v40, %v447_v43 }
 0x160   :  { %v393_v45 = vpop.permute.xlu1 %392  ;;  %v459_v46 = vrot.slane %v390_v44, %v458_v37 }
 0x161   :  { %v466_v49 = vrot.slane %v393_v45, %v465_v41 }
 0x162   :  { %v461_v53 = vsel %vm460_vm5, %v459_v46, %v454_v50 }
 0x163   :  { %v396_v54 = vpop.permute.xlu0 %395  ;;  %v468_v60 = vsel %vm467_vm6, %v466_v49, %v461_v53 }
 0x164   :  { %v399_v55 = vpop.permute.xlu1 %398  ;;  %v473_v56 = vrot.slane %v396_v54, %v472_v47 }
 0x165   :  { %v480_v59 = vrot.slane %v399_v55, %v479_v51 }
 0x166   :  { %v475_v63 = vsel %vm474_vm7, %v473_v56, %v468_v60 }
 0x167   :  { %v402_v2 = vpop.permute.xlu0 %401  ;;  %v482_v8 = vsel %vm481_vm8, %v480_v59, %v475_v63 }
 0x168   :  { %v405_v3 = vpop.permute.xlu1 %404  ;;  %v487_v4 = vrot.slane %v402_v2, %v486_v57 }
 0x169   :  { %v494_v7 = vrot.slane %v405_v3, %v493_v61 }
 0x16a   :  { %v489_v12 = vsel %vm488_vm9, %v487_v4, %v482_v8 }
 0x16b   :  { %v408_v13 = vpop.permute.xlu0 %407  ;;  %v496_v20 = vsel %vm495_vm10, %v494_v7, %v489_v12 }
 0x16c   :  { %v411_v14 = vpop.permute.xlu1 %410  ;;  %v501_v15 = vrot.slane %v408_v13, %v500_v5 }
 0x16d   :  { %v508_v19 = vrot.slane %v411_v14, %v507_v9 }
 0x16e   :  { %v503_v22 = vsel %vm502_vm11, %v501_v15, %v496_v20 }
 0x16f   :  { %v414_v11 = vpop.permute.xlu0 %413  ;;  %v510_v0 = vsel %vm509_vm12, %v508_v19, %v503_v22 }
 0x170   :  { %v417_v23 = vpop.permute.xlu1 %416  ;;  %v515_v24 = vrot.slane %v414_v11, %v514_v16 }
 0x171   :  { %v522_v26 = vrot.slane %v417_v23, %v521_v21 }
 0x172   :  { %v517_v27 = vsel %vm516_vm13, %v515_v24, %v510_v0 }
 0x173   :  { %v420_v28 = vpop.permute.xlu0 %419  ;;  %v524_v29 = vsel %vm523_vm14, %v522_v26, %v517_v27 }
 0x174   :  { %v529_v17 = vrot.slane %v420_v28, %v528_v25 }
 0x176   :  { %v531_v30 = vsel %vm530_vm15, %v529_v17, %v524_v29 }
 0x177   :  { %533 = vst [vmem:[#allocation6] sm:$0x1] %v531_v30 }
 0x178   :  { %671 = shalt.err (!%p668_p12)
}
 0x179   :  { %s672_s12 = scalar_lea.hbm %s844_s4, 16 }
 0x17a   :  { %p673_p13 = scmp.ne.s32.totalorder %s844_s4, %s672_s12  ;;  %p676_p0 = scmp.lt.u32.totalorder %s672_s12, %s844_s4 }
 0x17c   :  { %p678_p1 = pnand %p676_p0, %p673_p13 }
 0x17e   :  { %681 = shalt.err (!%p678_p1)
}
 0x17f   :  { %543 = dma.vmem_to_hbm [thread:$0]  %s541_s7, 16, %s844_s4, [#allocation5]  }
 0x180   :  { %684 = dma.done.wait [#allocation5], 16  }
 0x181   :  { %685 = vsyncadd [#allocation5], 4294967280 }
 0x182   :  { %547 = vsyncpa [#allocation4], 1 }
 0x183   :  { %548 = vsyncpa [#allocation5], 1 }

</bundles_post_ra>
